<compile_context>
chip_gen: v7x
topology: tpu7x:2x2x1
jax: 0.10.0
libtpu: 0.0.40
codegen_flags: <defaults>
</compile_context>

<pallas_src>
import numpy as np
import jax
import jax.numpy as jnp
from jax.experimental import pallas as pl
from jax.experimental.pallas import tpu as pltpu

HIDDEN_DIM = 32      # CONTEXT_HIDDEN_DIM
POS_DIM = 128        # pos_embed output dim
NUM_CLASSES = 8      # len(obj_classes)
BN_EPS = 1e-5

HP = 128                         # padded hidden width (lane-dense)
GATE_ORDER = (0, 1, 3, 2)        # PyTorch (i,f,g,o) -> packed order (i,f,o,g)
assert 2 * HIDDEN_DIM <= HP


# ---------------------------------------------------------------------------
# Pallas kernel: fused bidirectional LSTM recurrence (the serial part).
# ---------------------------------------------------------------------------
def _bilstm_kernel(gx_ref, whh_ref, o_ref):
    """Fused fwd+bwd LSTM recurrence with lane-padded hidden state.

    gx_ref : [T, B, 4*HP] f32 precomputed x @ W_ih + b gate pre-activations.
             Gate groups in order [i | f | o | g]; within each 128-lane group:
             [fwd gate (H) | bwd gate (H) | zero pad].  Fwd half is in forward
             time order, bwd half in per-sequence reversed order.
    whh_ref: [HP, 4*HP] bf16 recurrent weight; rows 0:H -> fwd hidden, H:2H ->
             bwd hidden, rest zero.  Column layout matches gx.
    o_ref  : [T, B, HP] f32 hidden states: lanes 0:H = h_fwd(t), H:2H =
             h_bwd(reversed step t), rest zero padding.
    """
    T, B, _ = gx_ref.shape
    whh = whh_ref[...]                      # bf16, hoisted; loop-invariant

    def step(t, h, c):
        # [B,HP] x [HP,4*HP] bf16 matmul, f32 accumulate (single MXU pass).
        g = gx_ref[t] + jnp.dot(h.astype(jnp.bfloat16), whh,
                                preferred_element_type=jnp.float32)      # [B, 4*HP]
        sg = jax.nn.sigmoid(g[:, :3 * HP])   # i|f|o in one EUP region (128-aligned)
        gg = jnp.tanh(g[:, 3 * HP:])         # g gate (128-aligned)
        i_g = sg[:, 0 * HP:1 * HP]
        f_g = sg[:, 1 * HP:2 * HP]
        o_g = sg[:, 2 * HP:3 * HP]
        c_new = f_g * c + i_g * gg
        h_new = o_g * jnp.tanh(c_new)
        o_ref[t] = h_new                     # unmasked lane-dense [B,128] store
        return h_new, c_new

    h = jnp.zeros((B, HP), jnp.float32)
    c = jnp.zeros((B, HP), jnp.float32)
    if T <= 64:
        # Fully unrolled static loop: static-index gx loads / o stores, full
        # scheduler visibility across steps.
        for t in range(T):
            h, c = step(t, h, c)
    else:
        jax.lax.fori_loop(0, T, lambda t, hc: step(t, hc[0], hc[1]), (h, c),
                          unroll=8)


def bilstm_recurrence(gates_x, whh_pad):
    """gates_x [T,B,4*HP] f32, whh_pad [HP,4*HP] bf16 -> hidden states [T,B,HP]."""
    T, B, G = gates_x.shape
    return pl.pallas_call(
        _bilstm_kernel,
        out_shape=jax.ShapeDtypeStruct((T, B, HP), jnp.float32),
        grid=(1,),
        in_specs=[pl.BlockSpec((T, B, G), lambda i: (0, 0, 0)),
                  pl.BlockSpec((HP, G), lambda i: (0, 0))],
        out_specs=pl.BlockSpec((T, B, HP), lambda i: (0, 0, 0)),
        compiler_params=pltpu.CompilerParams(dimension_semantics=("arbitrary",)),
    )(gates_x, whh_pad)


# ---------------------------------------------------------------------------
# Weight / gate packing for the fused bi-LSTM (PyTorch gate order i,f,g,o / dir).
# ---------------------------------------------------------------------------
def _pack_whh(whh_f, whh_b, H):
    """[H,4H] fwd + [H,4H] bwd recurrent weights -> [HP, 4*HP] bf16 padded block."""
    col_pad = jnp.zeros((2 * H, HP - 2 * H), jnp.float32)
    zf = jnp.zeros((H, H), jnp.float32)
    blocks = []
    for pt in GATE_ORDER:
        wf = whh_f[:, pt * H:(pt + 1) * H]                        # h_fwd -> fwd gate
        wb = whh_b[:, pt * H:(pt + 1) * H]                        # h_bwd -> bwd gate
        top = jnp.concatenate([jnp.concatenate([wf, zf], 1),
                               jnp.concatenate([zf, wb], 1)], 0)  # [2H,2H] block-diag
        blocks.append(jnp.concatenate([top, col_pad], 1))         # [2H, HP]
    whh = jnp.concatenate(blocks, axis=1)                         # [2H, 4*HP]
    whh = jnp.concatenate(
        [whh, jnp.zeros((HP - 2 * H, 4 * HP), jnp.float32)], axis=0)  # [HP, 4*HP]
    return whh.astype(jnp.bfloat16)


def _assemble_gates(gf, gb, H):
    """[TB,4H] fwd + [TB,4H] bwd gate pre-activations -> [TB, 4*HP] padded layout."""
    n = gf.shape[0]
    pad = jnp.zeros((n, HP - 2 * H), gf.dtype)
    parts = []
    for pt in GATE_ORDER:
        parts += [gf[:, pt * H:(pt + 1) * H], gb[:, pt * H:(pt + 1) * H], pad]
    return jnp.concatenate(parts, axis=-1)


def _bilstm(feats, gidx_fwd, gidx_bwd, pf, pb, H):
    """feats [N,D] (original order) -> padded bi-LSTM hidden states [T,B,2H]."""
    T, B = gidx_fwd.shape
    xf = jnp.take(feats, gidx_fwd.reshape(-1), axis=0)            # [T*B, D] fwd order
    xb = jnp.take(feats, gidx_bwd.reshape(-1), axis=0)            # [T*B, D] reversed
    # Hoisted input->hidden projection, one [T*B,D]x[D,4H] matmul per direction
    # (no half-zero 8H weights).  NOTE: b = b_ih + b_hh of a PyTorch checkpoint.
    gf = jnp.dot(xf, pf["wih"]) + pf["b"]                         # [T*B, 4H]
    gb = jnp.dot(xb, pb["wih"]) + pb["b"]                         # [T*B, 4H]
    gates_x = _assemble_gates(gf, gb, H).reshape(T, B, 4 * HP)    # [T,B,512]
    whh_pad = _pack_whh(pf["whh"], pb["whh"], H)                  # [HP,4*HP] bf16
    h_pad = bilstm_recurrence(gates_x, whh_pad)                   # [T,B,HP]
    return h_pad[:, :, :2 * H]                                    # strip lane padding


# ---------------------------------------------------------------------------
# Small dense stages (plain jnp inside jit; too small to justify pallas_calls).
# ---------------------------------------------------------------------------
def _pos_embed(binfo, p):
    h = jnp.dot(binfo, p["w1"]) + p["b1"]
    h = (h - p["mean"]) * jax.lax.rsqrt(p["var"] + BN_EPS) * p["gamma"] + p["beta"]
    h = jnp.dot(h, p["w2"]) + p["b2"]
    return jnp.maximum(h, 0.0)


def _gather_packed(h_pad, fwd_flat, bwd_flat, H):
    """[T,B,2H] padded hidden -> [N,2H] packed rows with aligned fwd|bwd halves."""
    T, B, H2 = h_pad.shape
    flat = h_pad.reshape(T * B, H2)
    return jnp.concatenate([jnp.take(flat, fwd_flat, axis=0)[:, :H],
                            jnp.take(flat, bwd_flat, axis=0)[:, H:]], axis=-1)


@jax.jit
def _forward_device(params, binfo, labels, gidx_fwd, gidx_bwd,
                    fwd_flat, bwd_flat, inv_perm):
    H = HIDDEN_DIM
    pos_embed = _pos_embed(binfo, params["pos"])                              # [N,128]

    # ---- object context: fused bi-LSTM over pos_embed, then lin_obj_h -------
    h_obj = _bilstm(pos_embed, gidx_fwd, gidx_bwd,
                    params["obj_lstm_f"], params["obj_lstm_b"], H)            # [T,B,2H]
    enc_packed = _gather_packed(h_obj, fwd_flat, bwd_flat, H)                 # [N,2H]
    enc_packed = jnp.dot(enc_packed, params["lin_obj"]["w"]) + params["lin_obj"]["b"]
    obj_ctx = jnp.take(enc_packed, inv_perm, axis=0)                          # [N,H]

    # predcls: obj_preds = gt labels, obj_dists = to_onehot(labels, C, fill=1000)
    oh = jax.nn.one_hot(labels, NUM_CLASSES, dtype=jnp.float32)
    obj_dists = jnp.where(oh > 0, 1000.0, -1000.0)
    obj_preds = labels

    # ---- edge context: fused bi-LSTM over cat(pos_embed, obj_ctx), lin_edge_h
    edge_feats = jnp.concatenate([pos_embed, obj_ctx], axis=-1)               # [N,128+H]
    h_edge = _bilstm(edge_feats, gidx_fwd, gidx_bwd,
                     params["edge_lstm_f"], params["edge_lstm_b"], H)
    edge_packed = _gather_packed(h_edge, fwd_flat, bwd_flat, H)
    edge_packed = jnp.dot(edge_packed, params["lin_edge"]["w"]) + params["lin_edge"]["b"]
    edge_ctx = jnp.take(edge_packed, inv_perm, axis=0)                        # [N,H]

    return obj_dists, obj_preds, edge_ctx


# ---------------------------------------------------------------------------
# Host-side glue: box encoding and sort_rois / PackedSequence bookkeeping.
# ---------------------------------------------------------------------------
def encode_box_info(boxes_list, img_sizes):
    infos = []
    for boxes, (wid, hei) in zip(boxes_list, img_sizes):
        wh = boxes[:, 2:4] - boxes[:, 0:2] + 1.0
        xy = boxes[:, 0:2] + 0.5 * wh
        w, h = wh[:, 0:1], wh[:, 1:2]
        x, y = xy[:, 0:1], xy[:, 1:2]
        x1, y1, x2, y2 = boxes[:, 0:1], boxes[:, 1:2], boxes[:, 2:3], boxes[:, 3:4]
        info = np.concatenate([w / wid, h / hei, x / wid, y / hei, x1 / wid,
                               y1 / hei, x2 / wid, y2 / hei, w * h / (wid * hei)], -1)
        infos.append(info)
    return np.concatenate(infos, 0).astype(np.float32)


def build_packing(num_objs, c_x):
    """sort_rois / sort_by_score + PackedSequence layout as static int32 index maps."""
    num_im = len(num_objs)
    offsets = np.concatenate([[0], np.cumsum(num_objs)]).astype(int)
    seq_order = []
    for i in range(num_im):
        idx = np.arange(offsets[i], offsets[i + 1])
        order = idx[np.argsort(-c_x[offsets[i]:offsets[i + 1]], kind="stable")]
        seq_order.append(order)
    img_order = sorted(range(num_im), key=lambda i: (-num_objs[i], i))
    T, B = int(max(num_objs)), num_im
    perm, tb_t, tb_b = [], [], []
    for t in range(T):
        for b, i in enumerate(img_order):
            if num_objs[i] > t:
                perm.append(int(seq_order[i][t]))
                tb_t.append(t)
                tb_b.append(b)
    perm = np.array(perm, np.int32)
    inv_perm = np.argsort(perm).astype(np.int32)
    gather_idx = np.zeros((T, B), np.int32)
    rev_t = np.tile(np.arange(T, dtype=np.int32)[:, None], (1, B))
    for b, i in enumerate(img_order):
        n = num_objs[i]
        for t in range(n):
            gather_idx[t, b] = seq_order[i][t]
            rev_t[t, b] = n - 1 - t
    tb_t = np.array(tb_t, np.int32)
    tb_b = np.array(tb_b, np.int32)
    gidx_bwd = gather_idx[rev_t, np.arange(B, dtype=np.int32)[None, :]]
    fwd_flat = (tb_t * B + tb_b).astype(np.int32)
    bwd_flat = (rev_t[tb_t, tb_b] * B + tb_b).astype(np.int32)
    return dict(gidx_fwd=gather_idx, gidx_bwd=gidx_bwd,
                fwd_flat=fwd_flat, bwd_flat=bwd_flat, inv_perm=inv_perm)


def lstm_context_spatial_forward(boxes_list, img_sizes, labels, params):
    num_objs = [int(b.shape[0]) for b in boxes_list]
    binfo = encode_box_info(boxes_list, img_sizes)
    boxes_all = np.concatenate(boxes_list, 0)
    c_x = 0.5 * (boxes_all[:, 0] + boxes_all[:, 2])
    pk = build_packing(num_objs, c_x)
    obj_dists, obj_preds, edge_ctx = _forward_device(
        params,
        jnp.asarray(binfo),
        jnp.asarray(labels, dtype=jnp.int32),
        jnp.asarray(pk["gidx_fwd"]), jnp.asarray(pk["gidx_bwd"]),
        jnp.asarray(pk["fwd_flat"]), jnp.asarray(pk["bwd_flat"]),
        jnp.asarray(pk["inv_perm"]))
    return obj_dists, obj_preds, edge_ctx, None


# ---------------------------------------------------------------------------
# Deterministic parameter init + example
# ---------------------------------------------------------------------------
def init_params(key):
    H = HIDDEN_DIM
    ks = jax.random.split(key, 32)
    k = iter(ks)

    def nrm(shape, scale=0.1):
        return scale * jax.random.normal(next(k), shape, dtype=jnp.float32)

    def lstm(in_dim):
        # single bias per direction (= b_ih + b_hh of a PyTorch checkpoint)
        return {"wih": nrm((in_dim, 4 * H)), "whh": nrm((H, 4 * H)), "b": nrm((1, 4 * H))}

    return {
        "pos": {
            "w1": nrm((9, 32)), "b1": nrm((1, 32)),
            "gamma": 1.0 + nrm((1, 32)), "beta": nrm((1, 32)),
            "mean": jnp.zeros((1, 32), jnp.float32), "var": jnp.ones((1, 32), jnp.float32),
            "w2": nrm((32, POS_DIM)), "b2": nrm((1, POS_DIM)),
        },
        "obj_lstm_f": lstm(POS_DIM),
        "obj_lstm_b": lstm(POS_DIM),
        "lin_obj": {"w": nrm((2 * H, H)), "b": nrm((1, H))},
        "edge_lstm_f": lstm(H + POS_DIM),
        "edge_lstm_b": lstm(H + POS_DIM),
        "lin_edge": {"w": nrm((2 * H, H)), "b": nrm((1, H))},
    }


if __name__ == "__main__":
    key = jax.random.PRNGKey(0)
    kp, kb, kl = jax.random.split(key, 3)
    params = init_params(kp)

    num_objs = [5, 3]                          # 2 images, 8 ROIs total
    img_sizes = [(64.0, 48.0), (80.0, 60.0)]   # (width, height), xyxy boxes
    bkeys = jax.random.split(kb, len(num_objs))
    boxes_list = []
    for i, (n, (wid, hei)) in enumerate(zip(num_objs, img_sizes)):
        k1, k2 = jax.random.split(bkeys[i])
        xy1 = jax.random.uniform(k1, (n, 2)) * jnp.array([wid * 0.5, hei * 0.5])
        wh = 1.0 + jax.random.uniform(k2, (n, 2)) * jnp.array([wid * 0.4, hei * 0.4])
        boxes = jnp.concatenate([xy1, xy1 + wh], axis=-1)
        boxes_list.append(np.asarray(boxes, dtype=np.float32))
    labels = np.asarray(jax.random.randint(kl, (sum(num_objs),), 1, NUM_CLASSES),
                        dtype=np.int32)

    obj_dists, obj_preds, edge_ctx, _ = lstm_context_spatial_forward(
        boxes_list, img_sizes, labels, params)

    jax.block_until_ready(obj_dists)
    jax.block_until_ready(edge_ctx)
    assert obj_dists.shape == (sum(num_objs), NUM_CLASSES)
    assert obj_preds.shape == (sum(num_objs),)
    assert edge_ctx.shape == (sum(num_objs), HIDDEN_DIM)
    assert bool(jnp.all(jnp.isfinite(edge_ctx)))
    print("KERNEL_OK")
</pallas_src>

<mosaic_0001>
module attributes {stable_mosaic.version = 11 : i64} {
  func.func @_bilstm_kernel(%arg0: i32, %arg1: memref<5x2x512xf32, #tpu.memory_space<vmem>>, %arg2: memref<128x512xbf16, #tpu.memory_space<vmem>>, %arg3: memref<5x2x128xf32, #tpu.memory_space<vmem>>) attributes {dimension_semantics = [#tpu.dimension_semantics<arbitrary>], iteration_bounds = array<i64: 1>, scalar_prefetch = 0 : i64, scratch_operands = 0 : i64, tpu.core_type = #tpu.core_type<tc>, window_params = [{pipeline_mode = #tpu.pipeline_mode<synchronous>, transform_indices = @transform_0, window_bounds = array<i64: 5, 2, 512>}, {pipeline_mode = #tpu.pipeline_mode<synchronous>, transform_indices = @transform_1, window_bounds = array<i64: 128, 512>}, {pipeline_mode = #tpu.pipeline_mode<synchronous>, transform_indices = @transform_2, window_bounds = array<i64: 5, 2, 128>}]} {
    %c0 = arith.constant 0 : index
    %c0_0 = arith.constant 0 : index
    %0 = vector.load %arg2[%c0, %c0_0] : memref<128x512xbf16, #tpu.memory_space<vmem>>, vector<128x512xbf16>
    %cst = arith.constant 0.000000e+00 : f32
    %1 = vector.broadcast %cst : f32 to vector<2x128xf32>
    %cst_1 = arith.constant 0.000000e+00 : f32
    %2 = vector.broadcast %cst_1 : f32 to vector<2x128xf32>
    %c0_2 = arith.constant 0 : index
    %c0_3 = arith.constant 0 : index
    %c0_4 = arith.constant 0 : index
    %3 = vector.load %arg1[%c0_2, %c0_3, %c0_4] : memref<5x2x512xf32, #tpu.memory_space<vmem>>, vector<1x2x512xf32>
    %4 = vector.shape_cast %3 : vector<1x2x512xf32> to vector<2x512xf32>
    %5 = arith.truncf %1 : vector<2x128xf32> to vector<2x128xbf16>
    %cst_5 = arith.constant dense<0.000000e+00> : vector<2x512xf32>
    %6 = tpu.matmul %5, %0, %cst_5 {dimension_numbers = #tpu.dot_dimension_numbers<[1], [0], [0], [1], [0, 0, 1, 1], [], []>} : vector<2x128xbf16>, vector<128x512xbf16>, vector<2x512xf32> -> vector<2x512xf32>
    %7 = arith.addf %4, %6 : vector<2x512xf32>
    %8 = vector.extract_strided_slice %7 {offsets = [0, 0], sizes = [2, 384], strides = [1, 1]} : vector<2x512xf32> to vector<2x384xf32>
    %9 = arith.negf %8 : vector<2x384xf32>
    %10 = math.exp %9 : vector<2x384xf32>
    %cst_6 = arith.constant 1.000000e+00 : f32
    %11 = vector.broadcast %cst_6 : f32 to vector<2x384xf32>
    %12 = arith.addf %11, %10 : vector<2x384xf32>
    %13 = arith.divf %11, %12 : vector<2x384xf32>
    %14 = vector.extract_strided_slice %7 {offsets = [0, 384], sizes = [2, 128], strides = [1, 1]} : vector<2x512xf32> to vector<2x128xf32>
    %15 = math.tanh %14 : vector<2x128xf32>
    %16 = vector.extract_strided_slice %13 {offsets = [0, 0], sizes = [2, 128], strides = [1, 1]} : vector<2x384xf32> to vector<2x128xf32>
    %17 = vector.extract_strided_slice %13 {offsets = [0, 128], sizes = [2, 128], strides = [1, 1]} : vector<2x384xf32> to vector<2x128xf32>
    %18 = vector.extract_strided_slice %13 {offsets = [0, 256], sizes = [2, 128], strides = [1, 1]} : vector<2x384xf32> to vector<2x128xf32>
    %19 = arith.mulf %17, %2 : vector<2x128xf32>
    %20 = arith.mulf %16, %15 : vector<2x128xf32>
    %21 = arith.addf %19, %20 : vector<2x128xf32>
    %22 = math.tanh %21 : vector<2x128xf32>
    %23 = arith.mulf %18, %22 : vector<2x128xf32>
    %c0_7 = arith.constant 0 : index
    %c0_8 = arith.constant 0 : index
    %c0_9 = arith.constant 0 : index
    %24 = vector.load %arg3[%c0_7, %c0_8, %c0_9] : memref<5x2x128xf32, #tpu.memory_space<vmem>>, vector<1x2x128xf32>
    %25 = vector.shape_cast %24 : vector<1x2x128xf32> to vector<2x128xf32>
    %26 = vector.shape_cast %23 : vector<2x128xf32> to vector<1x2x128xf32>
    tpu.vector_store %arg3[%c0_7, %c0_8, %c0_9], %26 {strides = array<i32>} : memref<5x2x128xf32, #tpu.memory_space<vmem>>, vector<1x2x128xf32>,
    %c1 = arith.constant 1 : index
    %c0_10 = arith.constant 0 : index
    %c0_11 = arith.constant 0 : index
    %27 = vector.load %arg1[%c1, %c0_10, %c0_11] : memref<5x2x512xf32, #tpu.memory_space<vmem>>, vector<1x2x512xf32>
    %28 = vector.shape_cast %27 : vector<1x2x512xf32> to vector<2x512xf32>
    %29 = arith.truncf %23 : vector<2x128xf32> to vector<2x128xbf16>
    %cst_12 = arith.constant dense<0.000000e+00> : vector<2x512xf32>
    %30 = tpu.matmul %29, %0, %cst_12 {dimension_numbers = #tpu.dot_dimension_numbers<[1], [0], [0], [1], [0, 0, 1, 1], [], []>} : vector<2x128xbf16>, vector<128x512xbf16>, vector<2x512xf32> -> vector<2x512xf32>
    %31 = arith.addf %28, %30 : vector<2x512xf32>
    %32 = vector.extract_strided_slice %31 {offsets = [0, 0], sizes = [2, 384], strides = [1, 1]} : vector<2x512xf32> to vector<2x384xf32>
    %33 = arith.negf %32 : vector<2x384xf32>
    %34 = math.exp %33 : vector<2x384xf32>
    %cst_13 = arith.constant 1.000000e+00 : f32
    %35 = vector.broadcast %cst_13 : f32 to vector<2x384xf32>
    %36 = arith.addf %35, %34 : vector<2x384xf32>
    %37 = arith.divf %35, %36 : vector<2x384xf32>
    %38 = vector.extract_strided_slice %31 {offsets = [0, 384], sizes = [2, 128], strides = [1, 1]} : vector<2x512xf32> to vector<2x128xf32>
    %39 = math.tanh %38 : vector<2x128xf32>
    %40 = vector.extract_strided_slice %37 {offsets = [0, 0], sizes = [2, 128], strides = [1, 1]} : vector<2x384xf32> to vector<2x128xf32>
    %41 = vector.extract_strided_slice %37 {offsets = [0, 128], sizes = [2, 128], strides = [1, 1]} : vector<2x384xf32> to vector<2x128xf32>
    %42 = vector.extract_strided_slice %37 {offsets = [0, 256], sizes = [2, 128], strides = [1, 1]} : vector<2x384xf32> to vector<2x128xf32>
    %43 = arith.mulf %41, %21 : vector<2x128xf32>
    %44 = arith.mulf %40, %39 : vector<2x128xf32>
    %45 = arith.addf %43, %44 : vector<2x128xf32>
    %46 = math.tanh %45 : vector<2x128xf32>
    %47 = arith.mulf %42, %46 : vector<2x128xf32>
    %c1_14 = arith.constant 1 : index
    %c0_15 = arith.constant 0 : index
    %c0_16 = arith.constant 0 : index
    %48 = vector.load %arg3[%c1_14, %c0_15, %c0_16] : memref<5x2x128xf32, #tpu.memory_space<vmem>>, vector<1x2x128xf32>
    %49 = vector.shape_cast %48 : vector<1x2x128xf32> to vector<2x128xf32>
    %50 = vector.shape_cast %47 : vector<2x128xf32> to vector<1x2x128xf32>
    tpu.vector_store %arg3[%c1_14, %c0_15, %c0_16], %50 {strides = array<i32>} : memref<5x2x128xf32, #tpu.memory_space<vmem>>, vector<1x2x128xf32>,
    %c2 = arith.constant 2 : index
    %c0_17 = arith.constant 0 : index
    %c0_18 = arith.constant 0 : index
    %51 = vector.load %arg1[%c2, %c0_17, %c0_18] : memref<5x2x512xf32, #tpu.memory_space<vmem>>, vector<1x2x512xf32>
    %52 = vector.shape_cast %51 : vector<1x2x512xf32> to vector<2x512xf32>
    %53 = arith.truncf %47 : vector<2x128xf32> to vector<2x128xbf16>
    %cst_19 = arith.constant dense<0.000000e+00> : vector<2x512xf32>
    %54 = tpu.matmul %53, %0, %cst_19 {dimension_numbers = #tpu.dot_dimension_numbers<[1], [0], [0], [1], [0, 0, 1, 1], [], []>} : vector<2x128xbf16>, vector<128x512xbf16>, vector<2x512xf32> -> vector<2x512xf32>
    %55 = arith.addf %52, %54 : vector<2x512xf32>
    %56 = vector.extract_strided_slice %55 {offsets = [0, 0], sizes = [2, 384], strides = [1, 1]} : vector<2x512xf32> to vector<2x384xf32>
    %57 = arith.negf %56 : vector<2x384xf32>
    %58 = math.exp %57 : vector<2x384xf32>
    %cst_20 = arith.constant 1.000000e+00 : f32
    %59 = vector.broadcast %cst_20 : f32 to vector<2x384xf32>
    %60 = arith.addf %59, %58 : vector<2x384xf32>
    %61 = arith.divf %59, %60 : vector<2x384xf32>
    %62 = vector.extract_strided_slice %55 {offsets = [0, 384], sizes = [2, 128], strides = [1, 1]} : vector<2x512xf32> to vector<2x128xf32>
    %63 = math.tanh %62 : vector<2x128xf32>
    %64 = vector.extract_strided_slice %61 {offsets = [0, 0], sizes = [2, 128], strides = [1, 1]} : vector<2x384xf32> to vector<2x128xf32>
    %65 = vector.extract_strided_slice %61 {offsets = [0, 128], sizes = [2, 128], strides = [1, 1]} : vector<2x384xf32> to vector<2x128xf32>
    %66 = vector.extract_strided_slice %61 {offsets = [0, 256], sizes = [2, 128], strides = [1, 1]} : vector<2x384xf32> to vector<2x128xf32>
    %67 = arith.mulf %65, %45 : vector<2x128xf32>
    %68 = arith.mulf %64, %63 : vector<2x128xf32>
    %69 = arith.addf %67, %68 : vector<2x128xf32>
    %70 = math.tanh %69 : vector<2x128xf32>
    %71 = arith.mulf %66, %70 : vector<2x128xf32>
    %c2_21 = arith.constant 2 : index
    %c0_22 = arith.constant 0 : index
    %c0_23 = arith.constant 0 : index
    %72 = vector.load %arg3[%c2_21, %c0_22, %c0_23] : memref<5x2x128xf32, #tpu.memory_space<vmem>>, vector<1x2x128xf32>
    %73 = vector.shape_cast %72 : vector<1x2x128xf32> to vector<2x128xf32>
    %74 = vector.shape_cast %71 : vector<2x128xf32> to vector<1x2x128xf32>
    tpu.vector_store %arg3[%c2_21, %c0_22, %c0_23], %74 {strides = array<i32>} : memref<5x2x128xf32, #tpu.memory_space<vmem>>, vector<1x2x128xf32>,
    %c3 = arith.constant 3 : index
    %c0_24 = arith.constant 0 : index
    %c0_25 = arith.constant 0 : index
    %75 = vector.load %arg1[%c3, %c0_24, %c0_25] : memref<5x2x512xf32, #tpu.memory_space<vmem>>, vector<1x2x512xf32>
    %76 = vector.shape_cast %75 : vector<1x2x512xf32> to vector<2x512xf32>
    %77 = arith.truncf %71 : vector<2x128xf32> to vector<2x128xbf16>
    %cst_26 = arith.constant dense<0.000000e+00> : vector<2x512xf32>
    %78 = tpu.matmul %77, %0, %cst_26 {dimension_numbers = #tpu.dot_dimension_numbers<[1], [0], [0], [1], [0, 0, 1, 1], [], []>} : vector<2x128xbf16>, vector<128x512xbf16>, vector<2x512xf32> -> vector<2x512xf32>
    %79 = arith.addf %76, %78 : vector<2x512xf32>
    %80 = vector.extract_strided_slice %79 {offsets = [0, 0], sizes = [2, 384], strides = [1, 1]} : vector<2x512xf32> to vector<2x384xf32>
    %81 = arith.negf %80 : vector<2x384xf32>
    %82 = math.exp %81 : vector<2x384xf32>
    %cst_27 = arith.constant 1.000000e+00 : f32
    %83 = vector.broadcast %cst_27 : f32 to vector<2x384xf32>
    %84 = arith.addf %83, %82 : vector<2x384xf32>
    %85 = arith.divf %83, %84 : vector<2x384xf32>
    %86 = vector.extract_strided_slice %79 {offsets = [0, 384], sizes = [2, 128], strides = [1, 1]} : vector<2x512xf32> to vector<2x128xf32>
    %87 = math.tanh %86 : vector<2x128xf32>
    %88 = vector.extract_strided_slice %85 {offsets = [0, 0], sizes = [2, 128], strides = [1, 1]} : vector<2x384xf32> to vector<2x128xf32>
    %89 = vector.extract_strided_slice %85 {offsets = [0, 128], sizes = [2, 128], strides = [1, 1]} : vector<2x384xf32> to vector<2x128xf32>
    %90 = vector.extract_strided_slice %85 {offsets = [0, 256], sizes = [2, 128], strides = [1, 1]} : vector<2x384xf32> to vector<2x128xf32>
    %91 = arith.mulf %89, %69 : vector<2x128xf32>
    %92 = arith.mulf %88, %87 : vector<2x128xf32>
    %93 = arith.addf %91, %92 : vector<2x128xf32>
    %94 = math.tanh %93 : vector<2x128xf32>
    %95 = arith.mulf %90, %94 : vector<2x128xf32>
    %c3_28 = arith.constant 3 : index
    %c0_29 = arith.constant 0 : index
    %c0_30 = arith.constant 0 : index
    %96 = vector.load %arg3[%c3_28, %c0_29, %c0_30] : memref<5x2x128xf32, #tpu.memory_space<vmem>>, vector<1x2x128xf32>
    %97 = vector.shape_cast %96 : vector<1x2x128xf32> to vector<2x128xf32>
    %98 = vector.shape_cast %95 : vector<2x128xf32> to vector<1x2x128xf32>
    tpu.vector_store %arg3[%c3_28, %c0_29, %c0_30], %98 {strides = array<i32>} : memref<5x2x128xf32, #tpu.memory_space<vmem>>, vector<1x2x128xf32>,
    %c4 = arith.constant 4 : index
    %c0_31 = arith.constant 0 : index
    %c0_32 = arith.constant 0 : index
    %99 = vector.load %arg1[%c4, %c0_31, %c0_32] : memref<5x2x512xf32, #tpu.memory_space<vmem>>, vector<1x2x512xf32>
    %100 = vector.shape_cast %99 : vector<1x2x512xf32> to vector<2x512xf32>
    %101 = arith.truncf %95 : vector<2x128xf32> to vector<2x128xbf16>
    %cst_33 = arith.constant dense<0.000000e+00> : vector<2x512xf32>
    %102 = tpu.matmul %101, %0, %cst_33 {dimension_numbers = #tpu.dot_dimension_numbers<[1], [0], [0], [1], [0, 0, 1, 1], [], []>} : vector<2x128xbf16>, vector<128x512xbf16>, vector<2x512xf32> -> vector<2x512xf32>
    %103 = arith.addf %100, %102 : vector<2x512xf32>
    %104 = vector.extract_strided_slice %103 {offsets = [0, 0], sizes = [2, 384], strides = [1, 1]} : vector<2x512xf32> to vector<2x384xf32>
    %105 = arith.negf %104 : vector<2x384xf32>
    %106 = math.exp %105 : vector<2x384xf32>
    %cst_34 = arith.constant 1.000000e+00 : f32
    %107 = vector.broadcast %cst_34 : f32 to vector<2x384xf32>
    %108 = arith.addf %107, %106 : vector<2x384xf32>
    %109 = arith.divf %107, %108 : vector<2x384xf32>
    %110 = vector.extract_strided_slice %103 {offsets = [0, 384], sizes = [2, 128], strides = [1, 1]} : vector<2x512xf32> to vector<2x128xf32>
    %111 = math.tanh %110 : vector<2x128xf32>
    %112 = vector.extract_strided_slice %109 {offsets = [0, 0], sizes = [2, 128], strides = [1, 1]} : vector<2x384xf32> to vector<2x128xf32>
    %113 = vector.extract_strided_slice %109 {offsets = [0, 128], sizes = [2, 128], strides = [1, 1]} : vector<2x384xf32> to vector<2x128xf32>
    %114 = vector.extract_strided_slice %109 {offsets = [0, 256], sizes = [2, 128], strides = [1, 1]} : vector<2x384xf32> to vector<2x128xf32>
    %115 = arith.mulf %113, %93 : vector<2x128xf32>
    %116 = arith.mulf %112, %111 : vector<2x128xf32>
    %117 = arith.addf %115, %116 : vector<2x128xf32>
    %118 = math.tanh %117 : vector<2x128xf32>
    %119 = arith.mulf %114, %118 : vector<2x128xf32>
    %c4_35 = arith.constant 4 : index
    %c0_36 = arith.constant 0 : index
    %c0_37 = arith.constant 0 : index
    %120 = vector.load %arg3[%c4_35, %c0_36, %c0_37] : memref<5x2x128xf32, #tpu.memory_space<vmem>>, vector<1x2x128xf32>
    %121 = vector.shape_cast %120 : vector<1x2x128xf32> to vector<2x128xf32>
    %122 = vector.shape_cast %119 : vector<2x128xf32> to vector<1x2x128xf32>
    tpu.vector_store %arg3[%c4_35, %c0_36, %c0_37], %122 {strides = array<i32>} : memref<5x2x128xf32, #tpu.memory_space<vmem>>, vector<1x2x128xf32>,
    return
  }
  func.func @transform_0(%arg0: i32) -> (i32, i32, i32) {
    %c0_i32 = arith.constant 0 : i32
    %c0_i32_0 = arith.constant 0 : i32
    %c0_i32_1 = arith.constant 0 : i32
    %c0_i32_2 = arith.constant 0 : i32
    return %c0_i32, %c0_i32_0, %c0_i32_1 : i32, i32, i32
  }
  func.func @transform_1(%arg0: i32) -> (i32, i32) {
    %c0_i32 = arith.constant 0 : i32
    %c0_i32_0 = arith.constant 0 : i32
    %c0_i32_1 = arith.constant 0 : i32
    return %c0_i32, %c0_i32_0 : i32, i32
  }
  func.func @transform_2(%arg0: i32) -> (i32, i32, i32) {
    %c0_i32 = arith.constant 0 : i32
    %c0_i32_0 = arith.constant 0 : i32
    %c0_i32_1 = arith.constant 0 : i32
    %c0_i32_2 = arith.constant 0 : i32
    return %c0_i32, %c0_i32_0, %c0_i32_1 : i32, i32, i32
  }
}

</mosaic_0001>

<bundles_post_ra>
// kernel: _forward_device.2
= control target key start
LH: loop header
LB: loop body
LE: loop exit
PB: predicated region body
PF: predicated region fallthrough
CT: control target
= control target key end

     0   :  { %v990_v1 = vmov 0   ;;  %v991_v33 = vmov 1983009808   ;;  %v296_v35 = vlaneseq  ;;  %s1393_s1 = inlined_call_operand.vmem [shape: bf16[128,512], index: 1, kind: input, shape index: {}]   ;;  %s1394_s0 = inlined_call_operand.vmem [shape: f32[5,2,512], index: 0, kind: input, shape index: {}]   ;;  %s1395_s2 = inlined_call_operand.vmem [shape: f32[5,2,128], index: 2, kind: output, shape index: {}]  }
   0x1   :  { %v1010_v0 = vld [vmem:[%s1393_s1 + $0x4] ss:$16 sps:$4 sm:$0xff]   ;;  %237 = vmatprep.mubr.bf16.mxu0 %v990_v1  ;;  %278 = vmatprep.mubr.bf16.mxu1 %v990_v1  ;;  %v1017_v2 = vld [vmem:[%s1393_s1 + $0xc] ss:$16 sps:$4 sm:$0xff]   ;;  %v1023_v3 = vld [vmem:[%s1393_s1] ss:$16 sps:$4 sm:$0xff]   ;;  %v294_v34 = vunpack.c.l.s4 %v991_v33 }
   0x2   :  { %205 = vmatprep.subr.bf16.mxu0 %v1010_v0  ;;  %v1028_v4 = vld [vmem:[%s1393_s1 + $0x8] ss:$16 sps:$4 sm:$0xff]   ;;  %246 = vmatprep.subr.bf16.mxu1 %v1017_v2  ;;  %v1034_v5 = vld [vmem:[%s1393_s1 + $0x24] ss:$16 sps:$4 sm:$0xff]   ;;  %v1041_v6 = vld [vmem:[%s1393_s1 + $0x2c] ss:$16 sps:$4 sm:$0xff]  }
   0x3   :  { %206 = vmatpush1.bf16.msra.mxu0 %v1023_v3  ;;  %247 = vmatpush1.bf16.msra.mxu1 %v1028_v4  ;;  %v1046_v7 = vld [vmem:[%s1393_s1 + $0x20] ss:$16 sps:$4 sm:$0xff]   ;;  %v1052_v8 = vld [vmem:[%s1393_s1 + $0x28] ss:$16 sps:$4 sm:$0xff]   ;;  %v1058_v9 = vld [vmem:[%s1393_s1 + $0x44] ss:$16 sps:$4 sm:$0xff]   ;;  %v295_v36 = vunpack.c.0.s8 %v294_v34 }
   0x4   :  { %207 = vmatprep.subr.bf16.mxu0 %v1034_v5  ;;  %248 = vmatprep.subr.bf16.mxu1 %v1041_v6  ;;  %v1063_v10 = vld [vmem:[%s1393_s1 + $0x4c] ss:$16 sps:$4 sm:$0xff]   ;;  %v1068_v11 = vld [vmem:[%s1393_s1 + $0x40] ss:$16 sps:$4 sm:$0xff]   ;;  %v1073_v12 = vld [vmem:[%s1393_s1 + $0x48] ss:$16 sps:$4 sm:$0xff]  }
   0x5   :  { %v1080_v13 = vld [vmem:[%s1393_s1 + $0x64] ss:$16 sps:$4 sm:$0xff]   ;;  %v1087_v14 = vld [vmem:[%s1393_s1 + $0x6c] ss:$16 sps:$4 sm:$0xff]   ;;  %v1092_v15 = vld [vmem:[%s1393_s1 + $0x60] ss:$16 sps:$4 sm:$0xff]  }
   0x6   :  { %v1099_v16 = vld [vmem:[%s1393_s1 + $0x68] ss:$16 sps:$4 sm:$0xff]   ;;  %v1104_v17 = vld [vmem:[%s1393_s1 + $0x84] ss:$16 sps:$4 sm:$0xff]   ;;  %v1111_v18 = vld [vmem:[%s1393_s1 + $0x8c] ss:$16 sps:$4 sm:$0xff]  }
   0x7   :  { %208 = vmatpush1.bf16.msra.mxu0 %v1046_v7  ;;  %249 = vmatpush1.bf16.msra.mxu1 %v1052_v8  ;;  %v1116_v19 = vld [vmem:[%s1393_s1 + $0x80] ss:$16 sps:$4 sm:$0xff]   ;;  %v1121_v20 = vld [vmem:[%s1393_s1 + $0x88] ss:$16 sps:$4 sm:$0xff]   ;;  %v1128_v21 = vld [vmem:[%s1393_s1 + $0xa4] ss:$16 sps:$4 sm:$0xff]  }
   0x8   :  { %209 = vmatprep.subr.bf16.mxu0 %v1058_v9  ;;  %250 = vmatprep.subr.bf16.mxu1 %v1063_v10  ;;  %v1135_v22 = vld [vmem:[%s1393_s1 + $0xac] ss:$16 sps:$4 sm:$0xff]   ;;  %v1142_v23 = vld [vmem:[%s1393_s1 + $0xa0] ss:$16 sps:$4 sm:$0xff]   ;;  %v1147_v24 = vld [vmem:[%s1393_s1 + $0xa8] ss:$16 sps:$4 sm:$0xff]  }
   0x9   :  { %v1154_v25 = vld [vmem:[%s1393_s1 + $0xc4] ss:$16 sps:$4 sm:$0xff]   ;;  %v1159_v26 = vld [vmem:[%s1393_s1 + $0xcc] ss:$16 sps:$4 sm:$0xff]   ;;  %v1166_v27 = vld [vmem:[%s1393_s1 + $0xc0] ss:$16 sps:$4 sm:$0xff]  }
   0xa   :  { %v1171_v28 = vld [vmem:[%s1393_s1 + $0xc8] ss:$16 sps:$4 sm:$0xff]   ;;  %v1178_v29 = vld [vmem:[%s1393_s1 + $0xe4] ss:$16 sps:$4 sm:$0xff]   ;;  %v1183_v30 = vld [vmem:[%s1393_s1 + $0xec] ss:$16 sps:$4 sm:$0xff]  }
   0xb   :  { %210 = vmatpush1.bf16.msra.mxu0 %v1068_v11  ;;  %251 = vmatpush1.bf16.msra.mxu1 %v1073_v12  ;;  %v1190_v31 = vld [vmem:[%s1393_s1 + $0xe0] ss:$16 sps:$4 sm:$0xff]   ;;  %v1195_v32 = vld [vmem:[%s1393_s1 + $0xe8] ss:$16 sps:$4 sm:$0xff]   ;;  %v297_v37 = vshrl.u32 %v296_v35, 7 }
   0xc   :  { %211 = vmatprep.subr.bf16.mxu0 %v1080_v13  ;;  %252 = vmatprep.subr.bf16.mxu1 %v1087_v14  ;;  %v44_v51 = vld [vmem:[%s1394_s0] sm:$0xff] }
   0xd   :  { %v1239_v40 = vsub.s32 %v295_v36, %v297_v37 }
   0xf   :  { %212 = vmatpush1.bf16.msra.mxu0 %v1092_v15  ;;  %253 = vmatpush1.bf16.msra.mxu1 %v1099_v16 }
  0x10   :  { %213 = vmatprep.subr.bf16.mxu0 %v1104_v17  ;;  %254 = vmatprep.subr.bf16.mxu1 %v1111_v18 }
  0x13   :  { %214 = vmatpush1.bf16.msra.mxu0 %v1116_v19  ;;  %255 = vmatpush1.bf16.msra.mxu1 %v1121_v20 }
  0x14   :  { %215 = vmatprep.subr.bf16.mxu0 %v1128_v21  ;;  %256 = vmatprep.subr.bf16.mxu1 %v1135_v22 }
  0x17   :  { %216 = vmatpush1.bf16.msra.mxu0 %v1142_v23  ;;  %257 = vmatpush1.bf16.msra.mxu1 %v1147_v24 }
  0x18   :  { %217 = vmatprep.subr.bf16.mxu0 %v1154_v25  ;;  %258 = vmatprep.subr.bf16.mxu1 %v1159_v26 }
  0x1b   :  { %218 = vmatpush1.bf16.msra.mxu0 %v1166_v27  ;;  %259 = vmatpush1.bf16.msra.mxu1 %v1171_v28 }
  0x1c   :  { %219 = vmatprep.subr.bf16.mxu0 %v1178_v29  ;;  %260 = vmatprep.subr.bf16.mxu1 %v1183_v30 }
  0x1f   :  { %220 = vmatpush1.bf16.msra.mxu0 %v1190_v31  ;;  %261 = vmatpush1.bf16.msra.mxu1 %v1195_v32 }
  0x20   :  { %334 = vmatprep.subr.bf16.mxu0 %v1010_v0  ;;  %375 = vmatprep.subr.bf16.mxu1 %v1017_v2 }
  0x22   :  { %238 = vmatmul.mubr.bf16.vlgmr.msra.gmra.mrb[0].mxu0 %v990_v1  ;;  %279 = vmatmul.mubr.bf16.vlgmr.msra.gmra.mrb[0].mxu1 %v990_v1 }
  0x23   :  { %335 = vmatpush1.bf16.msra.mxu0 %v1023_v3  ;;  %376 = vmatpush1.bf16.msra.mxu1 %v1028_v4 }
  0x24   :  { %336 = vmatprep.subr.bf16.mxu0 %v1034_v5  ;;  %377 = vmatprep.subr.bf16.mxu1 %v1041_v6 }
  0x25   :  { %366 = vmatprep.mubr.bf16.mxu0 %v990_v1  ;;  %407 = vmatprep.mubr.bf16.mxu1 %v990_v1 }
  0x27   :  { %337 = vmatpush1.bf16.msra.mxu0 %v1046_v7  ;;  %378 = vmatpush1.bf16.msra.mxu1 %v1052_v8 }
  0x28   :  { %338 = vmatprep.subr.bf16.mxu0 %v1058_v9  ;;  %379 = vmatprep.subr.bf16.mxu1 %v1063_v10 }
  0x2b   :  { %339 = vmatpush1.bf16.msra.mxu0 %v1068_v11  ;;  %380 = vmatpush1.bf16.msra.mxu1 %v1073_v12 }
  0x2c   :  { %340 = vmatprep.subr.bf16.mxu0 %v1080_v13  ;;  %381 = vmatprep.subr.bf16.mxu1 %v1087_v14 }
  0x2f   :  { %341 = vmatpush1.bf16.msra.mxu0 %v1092_v15  ;;  %382 = vmatpush1.bf16.msra.mxu1 %v1099_v16 }
  0x30   :  { %342 = vmatprep.subr.bf16.mxu0 %v1104_v17  ;;  %383 = vmatprep.subr.bf16.mxu1 %v1111_v18 }
  0x33   :  { %343 = vmatpush1.bf16.msra.mxu0 %v1116_v19  ;;  %384 = vmatpush1.bf16.msra.mxu1 %v1121_v20 }
  0x34   :  { %344 = vmatprep.subr.bf16.mxu0 %v1128_v21  ;;  %385 = vmatprep.subr.bf16.mxu1 %v1135_v22 }
  0x37   :  { %345 = vmatpush1.bf16.msra.mxu0 %v1142_v23  ;;  %386 = vmatpush1.bf16.msra.mxu1 %v1147_v24 }
  0x38   :  { %346 = vmatprep.subr.bf16.mxu0 %v1154_v25  ;;  %387 = vmatprep.subr.bf16.mxu1 %v1159_v26 }
  0x3b   :  { %347 = vmatpush1.bf16.msra.mxu0 %v1166_v27  ;;  %388 = vmatpush1.bf16.msra.mxu1 %v1171_v28 }
  0x3c   :  { %348 = vmatprep.subr.bf16.mxu0 %v1178_v29  ;;  %389 = vmatprep.subr.bf16.mxu1 %v1183_v30 }
  0x3f   :  { %349 = vmatpush1.bf16.msra.mxu0 %v1190_v31  ;;  %390 = vmatpush1.bf16.msra.mxu1 %v1195_v32 }
  0x40   :  { %464 = vmatprep.subr.bf16.mxu0 %v1010_v0  ;;  %505 = vmatprep.subr.bf16.mxu1 %v1017_v2 }
  0xf5   :  { %v239_v38 = vpop.f32.mrb[0].mxu0  ;;  %v280_v39 = vpop.f32.mrb[0].mxu1 }
  0xf6   :  { %v241_v41 = vpop.f32.mrb[1].mxu0  ;;  %v282_v42 = vpop.f32.mrb[1].mxu1 }
  0xf7   :  { %v291_v43 = vcombine.low %v239_v38, %v241_v41  ;;  %v292_v44 = vcombine.low %v280_v39, %v282_v42  ;;  %v243_v45 = vpop.f32.mrb[2].mxu0  ;;  %v284_v46 = vpop.f32.mrb[2].mxu1 }
  0xf8   :  { %v244_v47 = vpop.f32.mrb[3].mxu0  ;;  %v285_v48 = vpop.f32.mrb[3].mxu1 }
  0xf9   :  { %v299_v49 = vrot.slane %v291_v43, %v1239_v40  ;;  %v306_v50 = vrot.slane %v292_v44, %v1239_v40 }
  0xfb   :  { %v307_v52 = vcombine.low %v299_v49, %v306_v50  ;;  %v888_v50 = vld [vmem:[%s1394_s0 + $0x8] sm:$0xff] }
  0xfd   :  { %v309_v53 = vadd.f32 %v307_v52, %v44_v51 }
  0xff   :  { %v887_v54 = vmul.f32 -1.442695, %v309_v53  ;;  %v317_v57 = vrot.slane %v309_v53, 6 }
 0x101   :  { %950 = vpow2.f32 %v887_v54 }
 0x10b   :  { %v951_v55 = vpop.eup %950 }
 0x10c   :  { %v313_v56 = vadd.f32 1.0, %v951_v55 }
 0x10e   :  { %952 = vrcp.f32 %v313_v56 }
 0x10f   :  { %954 = vtanh.f32 %v317_v57 }
 0x118   :  { %v953_v58 = vpop.eup %952 }
 0x119   :  { %v321_v59 = vrot.slane %v953_v58, 2  ;;  %v955_v60 = vpop.eup %954  ;;  %v327_v33 = vrot.slane %v953_v58, 4 }
 0x11a   :  { %v324_v62 = vmul.f32 %v955_v60, %v953_v58 }
 0x11b   :  { %v323_v61 = vmul.f32 0.0, %v321_v59 }
 0x11d   :  { %v1246_v63 = vadd.f32 %v324_v62, %v323_v61 }
 0x11f   :  { %956 = vtanh.f32 %v1246_v63 }
 0x129   :  { %v957_v34 = vpop.eup %956 }
 0x12a   :  { %v329_v35 = vmul.f32 %v957_v34, %v327_v33 }
 0x12c   :  { %330 = vst [vmem:[%s1395_s2] sm:$0x3] %v329_v35  ;;  %v333_v36 = vpack.c.bf16 %v329_v35, %v329_v35 }
 0x12e   :  { %367 = vmatmul.mubr.bf16.vlgmr.msra.gmra.mrb[4].mxu0 %v333_v36  ;;  %408 = vmatmul.mubr.bf16.vlgmr.msra.gmra.mrb[4].mxu1 %v333_v36 }
 0x12f   :  { %465 = vmatpush1.bf16.msra.mxu0 %v1023_v3  ;;  %506 = vmatpush1.bf16.msra.mxu1 %v1028_v4 }
 0x130   :  { %466 = vmatprep.subr.bf16.mxu0 %v1034_v5  ;;  %507 = vmatprep.subr.bf16.mxu1 %v1041_v6 }
 0x131   :  { %496 = vmatprep.mubr.bf16.mxu0 %v990_v1  ;;  %537 = vmatprep.mubr.bf16.mxu1 %v990_v1 }
 0x133   :  { %467 = vmatpush1.bf16.msra.mxu0 %v1046_v7  ;;  %508 = vmatpush1.bf16.msra.mxu1 %v1052_v8 }
 0x134   :  { %468 = vmatprep.subr.bf16.mxu0 %v1058_v9  ;;  %509 = vmatprep.subr.bf16.mxu1 %v1063_v10 }
 0x137   :  { %469 = vmatpush1.bf16.msra.mxu0 %v1068_v11  ;;  %510 = vmatpush1.bf16.msra.mxu1 %v1073_v12 }
 0x138   :  { %470 = vmatprep.subr.bf16.mxu0 %v1080_v13  ;;  %511 = vmatprep.subr.bf16.mxu1 %v1087_v14 }
 0x13b   :  { %471 = vmatpush1.bf16.msra.mxu0 %v1092_v15  ;;  %512 = vmatpush1.bf16.msra.mxu1 %v1099_v16 }
 0x13c   :  { %472 = vmatprep.subr.bf16.mxu0 %v1104_v17  ;;  %513 = vmatprep.subr.bf16.mxu1 %v1111_v18 }
 0x13f   :  { %473 = vmatpush1.bf16.msra.mxu0 %v1116_v19  ;;  %514 = vmatpush1.bf16.msra.mxu1 %v1121_v20 }
 0x140   :  { %474 = vmatprep.subr.bf16.mxu0 %v1128_v21  ;;  %515 = vmatprep.subr.bf16.mxu1 %v1135_v22 }
 0x143   :  { %475 = vmatpush1.bf16.msra.mxu0 %v1142_v23  ;;  %516 = vmatpush1.bf16.msra.mxu1 %v1147_v24 }
 0x144   :  { %476 = vmatprep.subr.bf16.mxu0 %v1154_v25  ;;  %517 = vmatprep.subr.bf16.mxu1 %v1159_v26 }
 0x147   :  { %477 = vmatpush1.bf16.msra.mxu0 %v1166_v27  ;;  %518 = vmatpush1.bf16.msra.mxu1 %v1171_v28 }
 0x148   :  { %478 = vmatprep.subr.bf16.mxu0 %v1178_v29  ;;  %519 = vmatprep.subr.bf16.mxu1 %v1183_v30 }
 0x14b   :  { %479 = vmatpush1.bf16.msra.mxu0 %v1190_v31  ;;  %520 = vmatpush1.bf16.msra.mxu1 %v1195_v32 }
 0x14c   :  { %594 = vmatprep.subr.bf16.mxu0 %v1010_v0  ;;  %635 = vmatprep.subr.bf16.mxu1 %v1017_v2 }
 0x201   :  { %v368_v37 = vpop.f32.mrb[4].mxu0  ;;  %v409_v38 = vpop.f32.mrb[4].mxu1 }
 0x202   :  { %v370_v39 = vpop.f32.mrb[5].mxu0  ;;  %v411_v41 = vpop.f32.mrb[5].mxu1 }
 0x203   :  { %v420_v42 = vcombine.low %v368_v37, %v370_v39  ;;  %v421_v43 = vcombine.low %v409_v38, %v411_v41  ;;  %v372_v44 = vpop.f32.mrb[6].mxu0  ;;  %v413_v45 = vpop.f32.mrb[6].mxu1 }
 0x204   :  { %v373_v46 = vpop.f32.mrb[7].mxu0  ;;  %v414_v47 = vpop.f32.mrb[7].mxu1 }
 0x205   :  { %v428_v48 = vrot.slane %v420_v42, %v1239_v40  ;;  %v435_v49 = vrot.slane %v421_v43, %v1239_v40 }
 0x207   :  { %v436_v51 = vcombine.low %v428_v48, %v435_v49 }
 0x209   :  { %v438_v52 = vadd.f32 %v888_v50, %v436_v51 }
 0x20b   :  { %v889_v53 = vmul.f32 -1.442695, %v438_v52  ;;  %v446_v56 = vrot.slane %v438_v52, 6 }
 0x20d   :  { %958 = vpow2.f32 %v889_v53 }
 0x217   :  { %v959_v54 = vpop.eup %958 }
 0x218   :  { %v442_v55 = vadd.f32 1.0, %v959_v54 }
 0x21a   :  { %960 = vrcp.f32 %v442_v55 }
 0x21b   :  { %962 = vtanh.f32 %v446_v56 }
 0x224   :  { %v961_v57 = vpop.eup %960 }
 0x225   :  { %v450_v58 = vrot.slane %v961_v57, 2  ;;  %v963_v59 = vpop.eup %962  ;;  %v456_v33 = vrot.slane %v961_v57, 4 }
 0x226   :  { %v453_v61 = vmul.f32 %v963_v59, %v961_v57 }
 0x227   :  { %v452_v60 = vmul.f32 %v450_v58, %v1246_v63 }
 0x229   :  { %v1292_v62 = vadd.f32 %v453_v61, %v452_v60 }
 0x22b   :  { %964 = vtanh.f32 %v1292_v62 }
 0x235   :  { %v965_v34 = vpop.eup %964 }
 0x236   :  { %v458_v35 = vmul.f32 %v965_v34, %v456_v33 }
 0x238   :  { %890 = vst [vmem:[%s1395_s2 + $0x2] sm:$0x3] %v458_v35  ;;  %v463_v36 = vpack.c.bf16 %v458_v35, %v458_v35 }
 0x23a   :  { %497 = vmatmul.mubr.bf16.vlgmr.msra.gmra.mrb[8].mxu0 %v463_v36  ;;  %538 = vmatmul.mubr.bf16.vlgmr.msra.gmra.mrb[8].mxu1 %v463_v36 }
 0x23b   :  { %595 = vmatpush1.bf16.msra.mxu0 %v1023_v3  ;;  %636 = vmatpush1.bf16.msra.mxu1 %v1028_v4 }
 0x23c   :  { %596 = vmatprep.subr.bf16.mxu0 %v1034_v5  ;;  %637 = vmatprep.subr.bf16.mxu1 %v1041_v6 }
 0x23d   :  { %626 = vmatprep.mubr.bf16.mxu0 %v990_v1  ;;  %667 = vmatprep.mubr.bf16.mxu1 %v990_v1 }
 0x23f   :  { %597 = vmatpush1.bf16.msra.mxu0 %v1046_v7  ;;  %638 = vmatpush1.bf16.msra.mxu1 %v1052_v8 }
 0x240   :  { %598 = vmatprep.subr.bf16.mxu0 %v1058_v9  ;;  %639 = vmatprep.subr.bf16.mxu1 %v1063_v10 }
 0x243   :  { %599 = vmatpush1.bf16.msra.mxu0 %v1068_v11  ;;  %640 = vmatpush1.bf16.msra.mxu1 %v1073_v12 }
 0x244   :  { %600 = vmatprep.subr.bf16.mxu0 %v1080_v13  ;;  %641 = vmatprep.subr.bf16.mxu1 %v1087_v14 }
 0x247   :  { %601 = vmatpush1.bf16.msra.mxu0 %v1092_v15  ;;  %642 = vmatpush1.bf16.msra.mxu1 %v1099_v16 }
 0x248   :  { %602 = vmatprep.subr.bf16.mxu0 %v1104_v17  ;;  %643 = vmatprep.subr.bf16.mxu1 %v1111_v18 }
 0x24b   :  { %603 = vmatpush1.bf16.msra.mxu0 %v1116_v19  ;;  %644 = vmatpush1.bf16.msra.mxu1 %v1121_v20 }
 0x24c   :  { %604 = vmatprep.subr.bf16.mxu0 %v1128_v21  ;;  %645 = vmatprep.subr.bf16.mxu1 %v1135_v22 }
 0x24f   :  { %605 = vmatpush1.bf16.msra.mxu0 %v1142_v23  ;;  %646 = vmatpush1.bf16.msra.mxu1 %v1147_v24 }
 0x250   :  { %606 = vmatprep.subr.bf16.mxu0 %v1154_v25  ;;  %647 = vmatprep.subr.bf16.mxu1 %v1159_v26 }
 0x253   :  { %607 = vmatpush1.bf16.msra.mxu0 %v1166_v27  ;;  %648 = vmatpush1.bf16.msra.mxu1 %v1171_v28 }
 0x254   :  { %608 = vmatprep.subr.bf16.mxu0 %v1178_v29  ;;  %649 = vmatprep.subr.bf16.mxu1 %v1183_v30 }
 0x257   :  { %609 = vmatpush1.bf16.msra.mxu0 %v1190_v31  ;;  %650 = vmatpush1.bf16.msra.mxu1 %v1195_v32 }
 0x258   :  { %724 = vmatprep.subr.bf16.mxu0 %v1010_v0  ;;  %765 = vmatprep.subr.bf16.mxu1 %v1017_v2  ;;  %v891_v0 = vld [vmem:[%s1394_s0 + $0x10] sm:$0xff] }
 0x30d   :  { %v498_v63 = vpop.f32.mrb[8].mxu0  ;;  %v539_v37 = vpop.f32.mrb[8].mxu1 }
 0x30e   :  { %v500_v38 = vpop.f32.mrb[9].mxu0  ;;  %v541_v39 = vpop.f32.mrb[9].mxu1 }
 0x30f   :  { %v550_v41 = vcombine.low %v498_v63, %v500_v38  ;;  %v551_v42 = vcombine.low %v539_v37, %v541_v39  ;;  %v502_v43 = vpop.f32.mrb[10].mxu0  ;;  %v543_v44 = vpop.f32.mrb[10].mxu1 }
 0x310   :  { %v503_v45 = vpop.f32.mrb[11].mxu0  ;;  %v544_v46 = vpop.f32.mrb[11].mxu1  ;;  %v897_v44 = vld [vmem:[%s1394_s0 + $0x20] sm:$0xff] }
 0x311   :  { %v558_v47 = vrot.slane %v550_v41, %v1239_v40  ;;  %v565_v48 = vrot.slane %v551_v42, %v1239_v40 }
 0x313   :  { %v566_v49 = vcombine.low %v558_v47, %v565_v48 }
 0x315   :  { %v568_v2 = vadd.f32 %v891_v0, %v566_v49 }
 0x317   :  { %v892_v50 = vmul.f32 -1.442695, %v568_v2  ;;  %v576_v53 = vrot.slane %v568_v2, 6 }
 0x319   :  { %966 = vpow2.f32 %v892_v50 }
 0x323   :  { %v967_v51 = vpop.eup %966 }
 0x324   :  { %v572_v52 = vadd.f32 1.0, %v967_v51 }
 0x326   :  { %968 = vrcp.f32 %v572_v52 }
 0x327   :  { %970 = vtanh.f32 %v576_v53 }
 0x330   :  { %v969_v54 = vpop.eup %968 }
 0x331   :  { %v580_v55 = vrot.slane %v969_v54, 2  ;;  %v971_v56 = vpop.eup %970  ;;  %v586_v60 = vrot.slane %v969_v54, 4 }
 0x332   :  { %v583_v58 = vmul.f32 %v971_v56, %v969_v54 }
 0x333   :  { %v582_v57 = vmul.f32 %v580_v55, %v1292_v62 }
 0x335   :  { %v1338_v59 = vadd.f32 %v583_v58, %v582_v57 }
 0x337   :  { %972 = vtanh.f32 %v1338_v59 }
 0x341   :  { %v973_v61 = vpop.eup %972 }
 0x342   :  { %v588_v33 = vmul.f32 %v973_v61, %v586_v60 }
 0x344   :  { %893 = vst [vmem:[%s1395_s2 + $0x4] sm:$0x3] %v588_v33  ;;  %v593_v34 = vpack.c.bf16 %v588_v33, %v588_v33 }
 0x346   :  { %627 = vmatmul.mubr.bf16.vlgmr.msra.gmra.mrb[12].mxu0 %v593_v34  ;;  %668 = vmatmul.mubr.bf16.vlgmr.msra.gmra.mrb[12].mxu1 %v593_v34 }
 0x347   :  { %725 = vmatpush1.bf16.msra.mxu0 %v1023_v3  ;;  %766 = vmatpush1.bf16.msra.mxu1 %v1028_v4 }
 0x348   :  { %726 = vmatprep.subr.bf16.mxu0 %v1034_v5  ;;  %767 = vmatprep.subr.bf16.mxu1 %v1041_v6 }
 0x349   :  { %756 = vmatprep.mubr.bf16.mxu0 %v990_v1  ;;  %797 = vmatprep.mubr.bf16.mxu1 %v990_v1 }
 0x34b   :  { %727 = vmatpush1.bf16.msra.mxu0 %v1046_v7  ;;  %768 = vmatpush1.bf16.msra.mxu1 %v1052_v8 }
 0x34c   :  { %728 = vmatprep.subr.bf16.mxu0 %v1058_v9  ;;  %769 = vmatprep.subr.bf16.mxu1 %v1063_v10 }
 0x34f   :  { %729 = vmatpush1.bf16.msra.mxu0 %v1068_v11  ;;  %770 = vmatpush1.bf16.msra.mxu1 %v1073_v12 }
 0x350   :  { %730 = vmatprep.subr.bf16.mxu0 %v1080_v13  ;;  %771 = vmatprep.subr.bf16.mxu1 %v1087_v14  ;;  %v894_v14 = vld [vmem:[%s1394_s0 + $0x18] sm:$0xff] }
 0x353   :  { %731 = vmatpush1.bf16.msra.mxu0 %v1092_v15  ;;  %772 = vmatpush1.bf16.msra.mxu1 %v1099_v16 }
 0x354   :  { %732 = vmatprep.subr.bf16.mxu0 %v1104_v17  ;;  %773 = vmatprep.subr.bf16.mxu1 %v1111_v18 }
 0x357   :  { %733 = vmatpush1.bf16.msra.mxu0 %v1116_v19  ;;  %774 = vmatpush1.bf16.msra.mxu1 %v1121_v20 }
 0x358   :  { %734 = vmatprep.subr.bf16.mxu0 %v1128_v21  ;;  %775 = vmatprep.subr.bf16.mxu1 %v1135_v22 }
 0x35b   :  { %735 = vmatpush1.bf16.msra.mxu0 %v1142_v23  ;;  %776 = vmatpush1.bf16.msra.mxu1 %v1147_v24 }
 0x35c   :  { %736 = vmatprep.subr.bf16.mxu0 %v1154_v25  ;;  %777 = vmatprep.subr.bf16.mxu1 %v1159_v26 }
 0x35f   :  { %737 = vmatpush1.bf16.msra.mxu0 %v1166_v27  ;;  %778 = vmatpush1.bf16.msra.mxu1 %v1171_v28 }
 0x360   :  { %738 = vmatprep.subr.bf16.mxu0 %v1178_v29  ;;  %779 = vmatprep.subr.bf16.mxu1 %v1183_v30 }
 0x363   :  { %739 = vmatpush1.bf16.msra.mxu0 %v1190_v31  ;;  %780 = vmatpush1.bf16.msra.mxu1 %v1195_v32 }
 0x419   :  { %v628_v1 = vpop.f32.mrb[12].mxu0  ;;  %v669_v3 = vpop.f32.mrb[12].mxu1 }
 0x41a   :  { %v630_v4 = vpop.f32.mrb[13].mxu0  ;;  %v671_v5 = vpop.f32.mrb[13].mxu1 }
 0x41b   :  { %v680_v6 = vcombine.low %v628_v1, %v630_v4  ;;  %v681_v7 = vcombine.low %v669_v3, %v671_v5  ;;  %v632_v8 = vpop.f32.mrb[14].mxu0  ;;  %v673_v9 = vpop.f32.mrb[14].mxu1 }
 0x41c   :  { %v633_v10 = vpop.f32.mrb[15].mxu0  ;;  %v674_v11 = vpop.f32.mrb[15].mxu1 }
 0x41d   :  { %v688_v12 = vrot.slane %v680_v6, %v1239_v40  ;;  %v695_v13 = vrot.slane %v681_v7, %v1239_v40 }
 0x41f   :  { %v696_v15 = vcombine.low %v688_v12, %v695_v13 }
 0x421   :  { %v698_v16 = vadd.f32 %v894_v14, %v696_v15 }
 0x423   :  { %v895_v17 = vmul.f32 -1.442695, %v698_v16  ;;  %v706_v20 = vrot.slane %v698_v16, 6 }
 0x425   :  { %974 = vpow2.f32 %v895_v17 }
 0x42f   :  { %v975_v18 = vpop.eup %974 }
 0x430   :  { %v702_v19 = vadd.f32 1.0, %v975_v18 }
 0x432   :  { %976 = vrcp.f32 %v702_v19 }
 0x433   :  { %978 = vtanh.f32 %v706_v20 }
 0x43c   :  { %v977_v21 = vpop.eup %976 }
 0x43d   :  { %v710_v22 = vrot.slane %v977_v21, 2  ;;  %v979_v23 = vpop.eup %978  ;;  %v716_v27 = vrot.slane %v977_v21, 4 }
 0x43e   :  { %v713_v25 = vmul.f32 %v979_v23, %v977_v21 }
 0x43f   :  { %v712_v24 = vmul.f32 %v710_v22, %v1338_v59 }
 0x441   :  { %v714_v26 = vadd.f32 %v713_v25, %v712_v24 }
 0x443   :  { %980 = vtanh.f32 %v714_v26 }
 0x44d   :  { %v981_v28 = vpop.eup %980 }
 0x44e   :  { %v718_v29 = vmul.f32 %v981_v28, %v716_v27 }
 0x450   :  { %896 = vst [vmem:[%s1395_s2 + $0x6] sm:$0x3] %v718_v29  ;;  %v723_v30 = vpack.c.bf16 %v718_v29, %v718_v29 }
 0x452   :  { %757 = vmatmul.mubr.bf16.vlgmr.msra.gmra.mrb[16].mxu0 %v723_v30  ;;  %798 = vmatmul.mubr.bf16.vlgmr.msra.gmra.mrb[16].mxu1 %v723_v30 }
 0x525   :  { %v758_v31 = vpop.f32.mrb[16].mxu0  ;;  %v799_v32 = vpop.f32.mrb[16].mxu1 }
 0x526   :  { %v760_v62 = vpop.f32.mrb[17].mxu0  ;;  %v801_v35 = vpop.f32.mrb[17].mxu1 }
 0x527   :  { %v810_v36 = vcombine.low %v758_v31, %v760_v62  ;;  %v811_v63 = vcombine.low %v799_v32, %v801_v35  ;;  %v762_v37 = vpop.f32.mrb[18].mxu0  ;;  %v803_v38 = vpop.f32.mrb[18].mxu1 }
 0x528   :  { %v763_v39 = vpop.f32.mrb[19].mxu0  ;;  %v804_v41 = vpop.f32.mrb[19].mxu1 }
 0x529   :  { %v818_v42 = vrot.slane %v810_v36, %v1239_v40  ;;  %v825_v43 = vrot.slane %v811_v63, %v1239_v40 }
 0x52b   :  { %v826_v45 = vcombine.low %v818_v42, %v825_v43 }
 0x52d   :  { %v828_v46 = vadd.f32 %v897_v44, %v826_v45 }
 0x52f   :  { %v898_v47 = vmul.f32 -1.442695, %v828_v46  ;;  %v836_v49 = vrot.slane %v828_v46, 6 }
 0x531   :  { %982 = vpow2.f32 %v898_v47 }
 0x53b   :  { %v983_v48 = vpop.eup %982 }
 0x53c   :  { %v832_v0 = vadd.f32 1.0, %v983_v48 }
 0x53e   :  { %984 = vrcp.f32 %v832_v0 }
 0x53f   :  { %986 = vtanh.f32 %v836_v49 }
 0x548   :  { %v985_v2 = vpop.eup %984 }
 0x549   :  { %v840_v50 = vrot.slane %v985_v2, 2  ;;  %v987_v51 = vpop.eup %986  ;;  %v846_v40 = vrot.slane %v985_v2, 4 }
 0x54a   :  { %v843_v53 = vmul.f32 %v987_v51, %v985_v2 }
 0x54b   :  { %v842_v52 = vmul.f32 %v840_v50, %v714_v26 }
 0x54d   :  { %v844_v54 = vadd.f32 %v843_v53, %v842_v52 }
 0x54f   :  { %988 = vtanh.f32 %v844_v54 }
 0x559   :  { %v989_v55 = vpop.eup %988 }
 0x55a   :  { %v848_v56 = vmul.f32 %v989_v55, %v846_v40 }
 0x55c   :  { %899 = vst [vmem:[%s1395_s2 + $0x8] sm:$0x3] %v848_v56 }

</bundles_post_ra>
